<compile_context>
chip_gen: v7x
topology: tpu7x:2x2x1
jax: 0.10.0
libtpu: 0.0.40
codegen_flags: <defaults>
</compile_context>

<pallas_src>
import math

import jax
import jax.numpy as jnp
from jax.experimental import pallas as pl
from jax.experimental.pallas import tpu as pltpu


def _fusion_kernel(x_ref, wqkv_ref, bqkv_ref, wfc_ref, bfc_ref, o_ref):
    """One batch element: fused QKV projection + per-head attention + fc_out, all heads."""
    H, D, Dp = wfc_ref.shape          # heads, head dim, padded output lanes
    HD = H * D
    S = x_ref.shape[1]

    x = x_ref[0]                                                           # (S, D)

    # One wide, lane-dense projection for all of Q, K, V and all heads.
    qkv = jnp.dot(x, wqkv_ref[...], preferred_element_type=jnp.float32)    # (S, 3*H*D)
    qkv = qkv + bqkv_ref[...]                                              # bias broadcast

    acc = jnp.zeros((S, Dp), dtype=jnp.float32)
    for h in range(H):                 # static unroll; H is small
        q = qkv[:, h * D:(h + 1) * D]                                      # scale pre-folded
        k = qkv[:, HD + h * D:HD + (h + 1) * D]
        v = qkv[:, 2 * HD + h * D:2 * HD + (h + 1) * D]

        scores = jnp.dot(q, k.T, preferred_element_type=jnp.float32)       # (S, S)
        m = jnp.max(scores, axis=-1, keepdims=True)
        e = jnp.exp(scores - m)
        inv = pl.reciprocal(jnp.sum(e, axis=-1, keepdims=True), approx=True)
        probs = e * inv

        ctx = jnp.dot(probs, v, preferred_element_type=jnp.float32)        # (S, D)
        # per-head slice of fc_out (output lanes padded to Dp=128k for unmasked stores)
        acc = acc + jnp.dot(ctx, wfc_ref[h], preferred_element_type=jnp.float32)

    o_ref[0] = (acc + bfc_ref[...]).astype(o_ref.dtype)                    # single store


def prepare_kernel_params(params, input_size, num_heads):
    """One-time re-layout of PyTorch-style Linear params into the kernel layout."""
    D, H = input_size, num_heads
    scale = 1.0 / math.sqrt(D)
    Dp = 128 * pl.cdiv(D, 128)

    wqkv = jnp.concatenate(
        [params["q_w"].T * scale, params["k_w"].T, params["v_w"].T], axis=1)   # (D, 3*H*D)
    bqkv = jnp.concatenate(
        [params["q_b"] * scale, params["k_b"], params["v_b"]])[None, :]        # (1, 3*H*D)

    wfc = jnp.pad(params["fc_w"].T, ((0, 0), (0, Dp - D)))                     # (H*D, Dp)
    wfc = wfc.reshape(H, D, Dp)
    bfc = jnp.pad(params["fc_b"], (0, Dp - D))[None, :]                        # (1, Dp)

    return {"wqkv": wqkv, "bqkv": bqkv, "wfc": wfc, "bfc": bfc, "Dp": Dp}


def self_attention_fusion(features_text, features_graph, kparams, num_heads):
    """JAX/Pallas equivalent of SelfAttentionFusion.forward.

    Returns (fused_embedding (B, S, D), combined_attention_mask (B, S)).
    """
    B, St, D = features_text.shape
    _, Sg, _ = features_graph.shape
    S = max(St, Sg)
    H = num_heads
    Dp = kparams["Dp"]

    # --- padding / mask glue (matches the PyTorch module; mask is returned, not applied) ---
    mask_t = jnp.ones((B, St), dtype=features_text.dtype)
    mask_g = jnp.ones((B, Sg), dtype=features_graph.dtype)
    if St < S:
        features_text = jnp.pad(features_text, ((0, 0), (0, S - St), (0, 0)))
        mask_t = jnp.pad(mask_t, ((0, 0), (0, S - St)))
    if Sg < S:
        features_graph = jnp.pad(features_graph, ((0, 0), (0, S - Sg), (0, 0)))
        mask_g = jnp.pad(mask_g, ((0, 0), (0, S - Sg)))

    x = features_text + features_graph          # combined_features
    mask = mask_t * mask_g                      # combined_attention_mask

    const2 = lambda b: (0, 0)
    const3 = lambda b: (0, 0, 0)

    fused_padded = pl.pallas_call(
        _fusion_kernel,
        out_shape=jax.ShapeDtypeStruct((B, S, Dp), jnp.float32),
        grid=(B,),
        in_specs=[
            pl.BlockSpec((1, S, D), lambda b: (b, 0, 0)),        # x: streamed per batch
            pl.BlockSpec((D, 3 * H * D), const2),                # wqkv: resident in VMEM
            pl.BlockSpec((1, 3 * H * D), const2),                # bqkv
            pl.BlockSpec((H, D, Dp), const3),                    # wfc (per-head blocks)
            pl.BlockSpec((1, Dp), const2),                       # bfc
        ],
        out_specs=pl.BlockSpec((1, S, Dp), lambda b: (b, 0, 0)), # lane-dense (128) stores
        compiler_params=pltpu.CompilerParams(
            dimension_semantics=("parallel",)),
    )(x, kparams["wqkv"], kparams["bqkv"], kparams["wfc"], kparams["bfc"])

    return fused_padded[:, :, :D], mask


def init_params(key, input_size, num_heads):
    """PyTorch-nn.Linear-layout parameters with matching uniform init bounds."""
    D, H = input_size, num_heads
    ks = jax.random.split(key, 8)
    lim_in = 1.0 / math.sqrt(D)          # q/k/v: in_features = D
    lim_fc = 1.0 / math.sqrt(D * H)      # fc_out: in_features = D*H

    def u(k, shape, lim):
        return jax.random.uniform(k, shape, jnp.float32, -lim, lim)

    return {
        "q_w": u(ks[0], (H * D, D), lim_in), "q_b": u(ks[1], (H * D,), lim_in),
        "k_w": u(ks[2], (H * D, D), lim_in), "k_b": u(ks[3], (H * D,), lim_in),
        "v_w": u(ks[4], (H * D, D), lim_in), "v_b": u(ks[5], (H * D,), lim_in),
        "fc_w": u(ks[6], (D, H * D), lim_fc), "fc_b": u(ks[7], (D,), lim_fc),
    }


def _reference(x, p, D, H):
    """Pure-JAX replica of the PyTorch forward on the combined (padded) features."""
    B, S, _ = x.shape
    q = (x @ p["q_w"].T + p["q_b"]).reshape(B, S, H, D).transpose(0, 2, 1, 3)
    k = (x @ p["k_w"].T + p["k_b"]).reshape(B, S, H, D).transpose(0, 2, 1, 3)
    v = (x @ p["v_w"].T + p["v_b"]).reshape(B, S, H, D).transpose(0, 2, 1, 3)
    s = jnp.einsum("bhqd,bhkd->bhqk", q, k) / math.sqrt(D)
    a = jax.nn.softmax(s, axis=-1)
    ctx = jnp.einsum("bhqk,bhkd->bhqd", a, v)
    ctx = ctx.transpose(0, 2, 1, 3).reshape(B, S, H * D)
    return ctx @ p["fc_w"].T + p["fc_b"]


if __name__ == "__main__":
    B, D, H = 2, 32, 2
    S_text, S_graph = 8, 6

    key = jax.random.PRNGKey(0)
    k_t, k_g, k_p = jax.random.split(key, 3)

    features_text = jax.random.normal(k_t, (B, S_text, D), jnp.float32)
    features_graph = jax.random.normal(k_g, (B, S_graph, D), jnp.float32)

    params = init_params(k_p, D, H)
    kparams = prepare_kernel_params(params, D, H)   # one-time weight re-layout

    fused, mask = self_attention_fusion(features_text, features_graph, kparams, H)
    fused = jax.block_until_ready(fused)
    mask = jax.block_until_ready(mask)

    # correctness check against a pure-JAX reference (same padding glue as the module)
    S = max(S_text, S_graph)
    xt = jnp.pad(features_text, ((0, 0), (0, S - S_text), (0, 0)))
    xg = jnp.pad(features_graph, ((0, 0), (0, S - S_graph), (0, 0)))
    ref = _reference(xt + xg, params, D, H)

    assert fused.shape == (B, S, D)
    assert mask.shape == (B, S)
    # tolerance is loose because the softmax denominator uses the EUP approx reciprocal
    assert jnp.allclose(fused, ref, atol=1e-2, rtol=1e-2), "kernel mismatch vs reference"

    print("KERNEL_OK")
</pallas_src>

<mosaic_0001>
module attributes {stable_mosaic.version = 11 : i64} {
  func.func @_fusion_kernel(%arg0: i32, %arg1: memref<1x8x32xf32, #tpu.memory_space<vmem>>, %arg2: memref<32x192xf32, #tpu.memory_space<vmem>>, %arg3: memref<1x192xf32, #tpu.memory_space<vmem>>, %arg4: memref<2x32x128xf32, #tpu.memory_space<vmem>>, %arg5: memref<1x128xf32, #tpu.memory_space<vmem>>, %arg6: memref<1x8x128xf32, #tpu.memory_space<vmem>>) attributes {dimension_semantics = [#tpu.dimension_semantics<parallel>], iteration_bounds = array<i64: 2>, scalar_prefetch = 0 : i64, scratch_operands = 0 : i64, tpu.core_type = #tpu.core_type<tc>, window_params = [{transform_indices = @transform_0, window_bounds = array<i64: 1, 8, 32>}, {pipeline_mode = #tpu.pipeline_mode<synchronous>, transform_indices = @transform_1, window_bounds = array<i64: 32, 192>}, {pipeline_mode = #tpu.pipeline_mode<synchronous>, transform_indices = @transform_2, window_bounds = array<i64: 1, 192>}, {pipeline_mode = #tpu.pipeline_mode<synchronous>, transform_indices = @transform_3, window_bounds = array<i64: 2, 32, 128>}, {pipeline_mode = #tpu.pipeline_mode<synchronous>, transform_indices = @transform_4, window_bounds = array<i64: 1, 128>}, {transform_indices = @transform_5, window_bounds = array<i64: 1, 8, 128>}]} {
    %c0 = arith.constant 0 : index
    %c0_0 = arith.constant 0 : index
    %c0_1 = arith.constant 0 : index
    %0 = vector.load %arg1[%c0, %c0_0, %c0_1] : memref<1x8x32xf32, #tpu.memory_space<vmem>>, vector<1x8x32xf32>
    %1 = vector.shape_cast %0 : vector<1x8x32xf32> to vector<8x32xf32>
    %c0_2 = arith.constant 0 : index
    %c0_3 = arith.constant 0 : index
    %2 = vector.load %arg2[%c0_2, %c0_3] : memref<32x192xf32, #tpu.memory_space<vmem>>, vector<32x192xf32>
    %cst = arith.constant dense<0.000000e+00> : vector<8x192xf32>
    %3 = tpu.matmul %1, %2, %cst {dimension_numbers = #tpu.dot_dimension_numbers<[1], [0], [0], [1], [0, 0, 1, 1], [], []>} : vector<8x32xf32>, vector<32x192xf32>, vector<8x192xf32> -> vector<8x192xf32>
    %c0_4 = arith.constant 0 : index
    %c0_5 = arith.constant 0 : index
    %4 = vector.load %arg3[%c0_4, %c0_5] : memref<1x192xf32, #tpu.memory_space<vmem>>, vector<1x192xf32>
    %5 = vector.broadcast %4 : vector<1x192xf32> to vector<8x192xf32>
    %6 = arith.addf %3, %5 : vector<8x192xf32>
    %cst_6 = arith.constant 0.000000e+00 : f32
    %7 = vector.broadcast %cst_6 : f32 to vector<8x128xf32>
    %8 = vector.extract_strided_slice %6 {offsets = [0, 0], sizes = [8, 32], strides = [1, 1]} : vector<8x192xf32> to vector<8x32xf32>
    %9 = vector.extract_strided_slice %6 {offsets = [0, 64], sizes = [8, 32], strides = [1, 1]} : vector<8x192xf32> to vector<8x32xf32>
    %10 = vector.extract_strided_slice %6 {offsets = [0, 128], sizes = [8, 32], strides = [1, 1]} : vector<8x192xf32> to vector<8x32xf32>
    %11 = tpu.transpose %9, [1, 0] : vector<8x32xf32> -> vector<32x8xf32>
    %cst_7 = arith.constant dense<0.000000e+00> : vector<8x8xf32>
    %12 = tpu.matmul %8, %11, %cst_7 {dimension_numbers = #tpu.dot_dimension_numbers<[1], [0], [0], [1], [0, 0, 1, 1], [], []>} : vector<8x32xf32>, vector<32x8xf32>, vector<8x8xf32> -> vector<8x8xf32>
    %cst_8 = arith.constant dense<0xFF800000> : vector<8xf32>
    %13 = vector.multi_reduction <maximumf>, %12, %cst_8 [1] : vector<8x8xf32> to vector<8xf32>
    %14 = vector.shape_cast %13 : vector<8xf32> to vector<8x1xf32>
    %15 = vector.broadcast %14 : vector<8x1xf32> to vector<8x8xf32>
    %16 = arith.subf %12, %15 : vector<8x8xf32>
    %17 = math.exp %16 : vector<8x8xf32>
    %cst_9 = arith.constant dense<0.000000e+00> : vector<8xf32>
    %18 = vector.multi_reduction <add>, %17, %cst_9 [1] : vector<8x8xf32> to vector<8xf32>
    %19 = vector.shape_cast %18 : vector<8xf32> to vector<8x1xf32>
    %20 = tpu.reciprocal %19 {approx = true} : vector<8x1xf32> -> vector<8x1xf32>
    %21 = vector.broadcast %20 : vector<8x1xf32> to vector<8x8xf32>
    %22 = arith.mulf %17, %21 : vector<8x8xf32>
    %cst_10 = arith.constant dense<0.000000e+00> : vector<8x32xf32>
    %23 = tpu.matmul %22, %10, %cst_10 {dimension_numbers = #tpu.dot_dimension_numbers<[1], [0], [0], [1], [0, 0, 1, 1], [], []>} : vector<8x8xf32>, vector<8x32xf32>, vector<8x32xf32> -> vector<8x32xf32>
    %c0_11 = arith.constant 0 : index
    %c0_12 = arith.constant 0 : index
    %c0_13 = arith.constant 0 : index
    %24 = vector.load %arg4[%c0_11, %c0_12, %c0_13] : memref<2x32x128xf32, #tpu.memory_space<vmem>>, vector<1x32x128xf32>
    %25 = vector.shape_cast %24 : vector<1x32x128xf32> to vector<32x128xf32>
    %cst_14 = arith.constant dense<0.000000e+00> : vector<8x128xf32>
    %26 = tpu.matmul %23, %25, %cst_14 {dimension_numbers = #tpu.dot_dimension_numbers<[1], [0], [0], [1], [0, 0, 1, 1], [], []>} : vector<8x32xf32>, vector<32x128xf32>, vector<8x128xf32> -> vector<8x128xf32>
    %27 = arith.addf %7, %26 : vector<8x128xf32>
    %28 = vector.extract_strided_slice %6 {offsets = [0, 32], sizes = [8, 32], strides = [1, 1]} : vector<8x192xf32> to vector<8x32xf32>
    %29 = vector.extract_strided_slice %6 {offsets = [0, 96], sizes = [8, 32], strides = [1, 1]} : vector<8x192xf32> to vector<8x32xf32>
    %30 = vector.extract_strided_slice %6 {offsets = [0, 160], sizes = [8, 32], strides = [1, 1]} : vector<8x192xf32> to vector<8x32xf32>
    %31 = tpu.transpose %29, [1, 0] : vector<8x32xf32> -> vector<32x8xf32>
    %cst_15 = arith.constant dense<0.000000e+00> : vector<8x8xf32>
    %32 = tpu.matmul %28, %31, %cst_15 {dimension_numbers = #tpu.dot_dimension_numbers<[1], [0], [0], [1], [0, 0, 1, 1], [], []>} : vector<8x32xf32>, vector<32x8xf32>, vector<8x8xf32> -> vector<8x8xf32>
    %cst_16 = arith.constant dense<0xFF800000> : vector<8xf32>
    %33 = vector.multi_reduction <maximumf>, %32, %cst_16 [1] : vector<8x8xf32> to vector<8xf32>
    %34 = vector.shape_cast %33 : vector<8xf32> to vector<8x1xf32>
    %35 = vector.broadcast %34 : vector<8x1xf32> to vector<8x8xf32>
    %36 = arith.subf %32, %35 : vector<8x8xf32>
    %37 = math.exp %36 : vector<8x8xf32>
    %cst_17 = arith.constant dense<0.000000e+00> : vector<8xf32>
    %38 = vector.multi_reduction <add>, %37, %cst_17 [1] : vector<8x8xf32> to vector<8xf32>
    %39 = vector.shape_cast %38 : vector<8xf32> to vector<8x1xf32>
    %40 = tpu.reciprocal %39 {approx = true} : vector<8x1xf32> -> vector<8x1xf32>
    %41 = vector.broadcast %40 : vector<8x1xf32> to vector<8x8xf32>
    %42 = arith.mulf %37, %41 : vector<8x8xf32>
    %cst_18 = arith.constant dense<0.000000e+00> : vector<8x32xf32>
    %43 = tpu.matmul %42, %30, %cst_18 {dimension_numbers = #tpu.dot_dimension_numbers<[1], [0], [0], [1], [0, 0, 1, 1], [], []>} : vector<8x8xf32>, vector<8x32xf32>, vector<8x32xf32> -> vector<8x32xf32>
    %c1 = arith.constant 1 : index
    %c0_19 = arith.constant 0 : index
    %c0_20 = arith.constant 0 : index
    %44 = vector.load %arg4[%c1, %c0_19, %c0_20] : memref<2x32x128xf32, #tpu.memory_space<vmem>>, vector<1x32x128xf32>
    %45 = vector.shape_cast %44 : vector<1x32x128xf32> to vector<32x128xf32>
    %cst_21 = arith.constant dense<0.000000e+00> : vector<8x128xf32>
    %46 = tpu.matmul %43, %45, %cst_21 {dimension_numbers = #tpu.dot_dimension_numbers<[1], [0], [0], [1], [0, 0, 1, 1], [], []>} : vector<8x32xf32>, vector<32x128xf32>, vector<8x128xf32> -> vector<8x128xf32>
    %47 = arith.addf %27, %46 : vector<8x128xf32>
    %c0_22 = arith.constant 0 : index
    %c0_23 = arith.constant 0 : index
    %48 = vector.load %arg5[%c0_22, %c0_23] : memref<1x128xf32, #tpu.memory_space<vmem>>, vector<1x128xf32>
    %49 = vector.broadcast %48 : vector<1x128xf32> to vector<8x128xf32>
    %50 = arith.addf %47, %49 : vector<8x128xf32>
    %c0_24 = arith.constant 0 : index
    %c0_25 = arith.constant 0 : index
    %c0_26 = arith.constant 0 : index
    %51 = vector.load %arg6[%c0_24, %c0_25, %c0_26] : memref<1x8x128xf32, #tpu.memory_space<vmem>>, vector<1x8x128xf32>
    %52 = vector.shape_cast %51 : vector<1x8x128xf32> to vector<8x128xf32>
    %53 = vector.shape_cast %50 : vector<8x128xf32> to vector<1x8x128xf32>
    tpu.vector_store %arg6[%c0_24, %c0_25, %c0_26], %53 {strides = array<i32>} : memref<1x8x128xf32, #tpu.memory_space<vmem>>, vector<1x8x128xf32>,
    return
  }
  func.func @transform_0(%arg0: i32) -> (i32, i32, i32) {
    %c0_i32 = arith.constant 0 : i32
    %c0_i32_0 = arith.constant 0 : i32
    %c0_i32_1 = arith.constant 0 : i32
    return %arg0, %c0_i32, %c0_i32_0 : i32, i32, i32
  }
  func.func @transform_1(%arg0: i32) -> (i32, i32) {
    %c0_i32 = arith.constant 0 : i32
    %c0_i32_0 = arith.constant 0 : i32
    %c0_i32_1 = arith.constant 0 : i32
    return %c0_i32, %c0_i32_0 : i32, i32
  }
  func.func @transform_2(%arg0: i32) -> (i32, i32) {
    %c0_i32 = arith.constant 0 : i32
    %c0_i32_0 = arith.constant 0 : i32
    %c0_i32_1 = arith.constant 0 : i32
    return %c0_i32, %c0_i32_0 : i32, i32
  }
  func.func @transform_3(%arg0: i32) -> (i32, i32, i32) {
    %c0_i32 = arith.constant 0 : i32
    %c0_i32_0 = arith.constant 0 : i32
    %c0_i32_1 = arith.constant 0 : i32
    %c0_i32_2 = arith.constant 0 : i32
    return %c0_i32, %c0_i32_0, %c0_i32_1 : i32, i32, i32
  }
  func.func @transform_4(%arg0: i32) -> (i32, i32) {
    %c0_i32 = arith.constant 0 : i32
    %c0_i32_0 = arith.constant 0 : i32
    %c0_i32_1 = arith.constant 0 : i32
    return %c0_i32, %c0_i32_0 : i32, i32
  }
  func.func @transform_5(%arg0: i32) -> (i32, i32, i32) {
    %c0_i32 = arith.constant 0 : i32
    %c0_i32_0 = arith.constant 0 : i32
    %c0_i32_1 = arith.constant 0 : i32
    return %arg0, %c0_i32, %c0_i32_0 : i32, i32, i32
  }
}

</mosaic_0001>

<bundles_post_ra>
// kernel: tpu_custom_call.1
= control target key start
LH: loop header
LB: loop body
LE: loop exit
PB: predicated region body
PF: predicated region fallthrough
CT: control target
= control target key end

     0   :  { %10 = vsyncpa [#allocation3], 0  ;;  %s1624_s0 = inlined_call_operand.hbm [shape: f32[2,8,32], index: 0, kind: input, shape index: {}]   ;;  %s1625_s1 = inlined_call_operand.hbm [shape: f32[32,192], index: 1, kind: input, shape index: {}]   ;;  %s1626_s2 = inlined_call_operand.vmem [shape: f32[1,192], index: 2, kind: input, shape index: {}]   ;;  %s1627_s3 = inlined_call_operand.hbm [shape: f32[2,32,128], index: 3, kind: input, shape index: {}]   ;;  %s1628_s4 = inlined_call_operand.vmem [shape: f32[1,128], index: 4, kind: input, shape index: {}]   ;;  %s1629_s5 = inlined_call_operand.hbm [shape: f32[2,8,128], index: 5, kind: output, shape index: {}]  }
   0x1   :  { %12 = vsyncpa [#allocation3 + $0x1], 0 }
   0x2   :  { %13 = vsyncpa [#allocation6], 0 }
   0x3   :  { %14 = vsyncpa [#allocation4], 0 }
   0x4   :  { %16 = vsyncpa [#allocation4 + $0x1], 0  ;;  %s1353_s18 = smov 0   ;;  %s1355_s19 = smov 0  }
   0x5   :  { %s1357_s20 = smov 0   ;;  %s1359_s21 = smov 0  }
   0x6 LB: > { %s1374_s22 = sadd.s32 4294967295, %s1307_s21   ;;  %s960_s23 = sadd.s32 4294967294, %s1307_s21   ;;  %s1307_s21 = sphi %s1359_s21, %s1649_s21   ;;  %s1303_s20 = sphi %s1357_s20, %s1648_s20   ;;  %s1299_s19 = sphi %s1355_s19, %s1647_s19   ;;  %s1295_s18 = sphi %s1353_s18, %s1646_s18  }
   0x7   : > { %p42_p0 = scmp.ne.s32.totalorder %s1299_s19, %s1295_s18  ;;  %p1630_p1 = scmp.eq.s32.totalorder %s1374_s22, 0 }
   0x8   : > { %p156_p3 = scmp.eq.s32.totalorder %s960_s23, 1  ;;  %p961_p5 = scmp.ge.s32.totalorder %s1307_s21, 1 }
   0x9   : > { %p1383_p4 = por %p1630_p1, %p42_p0  ;;  %p163_p7 = scmp.lt.s32.totalorder %s1307_s21, 3 }
   0xa   : > { %p1388_p6 = por %p156_p3, %p42_p0  ;;  %s1309_s27 = smov [#allocation5]  }
   0xb   : > { %s1633_s24 = scalar_select %p1383_p4, 1, 0 }
   0xc   : > { %s1634_s25 = scalar_select %p1388_p6, 1, 0 }
   0xd   : > { %p1393_p8 = pnand %p961_p5, %p163_p7  ;;  %s175_s28 = sshll.u32 %s1309_s27, 4  ;;  %s1397_s28 = int_to_ptr.vmem [resolvable:$true] %s175_s28 }
   0xe   : > { %s1310_s30 = smov [#allocation7]   ;;  %s1151_s9 = scalar_lea.hbm %s1625_s1, 1024 }
   0xf   : > { %p1078_p9 = pneg %p1393_p8  ;;  %s191_s6 = sshll.u32 %s1310_s30, 4  ;;  %s1408_s6 = int_to_ptr.vmem [resolvable:$true] %s191_s6 }
  0x10   : > { %p1152_p12 = scmp.ne.s32.totalorder %s1625_s1, %s1151_s9  ;;  %p1158_p5 = scmp.lt.u32.totalorder %s1151_s9, %s1625_s1 }
  0x11   : > { %p1404_p11 = pnand %p1078_p9, %p1630_p1 }
  0x13   : > { %p1153_p13 = pneg %p1404_p11 }
  0x15   : > { %p1154_p0 = pnand %p1153_p13, %p1152_p12 }
  0x17   : > { %p1155_p3 = pneg %p1154_p0 }
  0x19   : > { %p1160_p7 = pnand %p1158_p5, %p1155_p3 }
  0x1b   : > { %1163 = shalt.err (!%p1160_p7)
}
  0x1c   : > { %s1164_s14 = scalar_lea.vmem %s1397_s28, 1024  ;;  %p1172_p2 = scmp.lt.s32.totalorder %s1397_s28, %s1397_s28 }
  0x1d   : > { %p1165_p9 = scmp.ne.s32.totalorder %s1397_s28, %s1164_s14  ;;  %p1173_p12 = scmp.lt.s32.totalorder %s1164_s14, %s1164_s14 }
  0x1f   : > { %p1167_p10 = pnand %p1165_p9, %p1153_p13  ;;  %p1174_p0 = por %p1173_p12, %p1172_p2 }
  0x21   : > { %p1168_p1 = pneg %p1167_p10 }
  0x23   : > { %p1175_p6 = pnand %p1174_p0, %p1168_p1 }
  0x25   : > { %1178 = shalt.err (!%p1175_p6)
}
  0x26   : > { %s1311_s15 = smov 256   ;;  %s1312_s16 = smov 16  }
  0x27   : > { %1081 = dma.hbm_to_vmem [thread:$0]  (!%p1404_p11), %s1625_s1, 1024, %s1397_s28, [#allocation6], %s1311_s15, %s1311_s15, %s1312_s16  }
  0x28   : > { %s1179_s7 = scalar_lea.hbm %s1627_s3, 1024 }
  0x29   : > { %p1180_p2 = scmp.ne.s32.totalorder %s1627_s3, %s1179_s7  ;;  %p1186_p10 = scmp.lt.u32.totalorder %s1179_s7, %s1627_s3 }
  0x2b   : > { %p1182_p1 = pnand %p1180_p2, %p1153_p13 }
  0x2d   : > { %p1183_p6 = pneg %p1182_p1 }
  0x2f   : > { %p1188_p3 = pnand %p1186_p10, %p1183_p6 }
  0x31   : > { %1191 = shalt.err (!%p1188_p3)
}
  0x32   : > { %s1192_s28 = scalar_lea.vmem %s1408_s6, 1024  ;;  %p1200_p12 = scmp.lt.s32.totalorder %s1408_s6, %s1408_s6 }
  0x33   : > { %p1193_p5 = scmp.ne.s32.totalorder %s1408_s6, %s1192_s28  ;;  %p1201_p0 = scmp.lt.s32.totalorder %s1192_s28, %s1192_s28 }
  0x35   : > { %p1195_p7 = pnand %p1193_p5, %p1153_p13  ;;  %p1202_p2 = por %p1201_p0, %p1200_p12 }
  0x37   : > { %p1196_p9 = pneg %p1195_p7 }
  0x39   : > { %p1203_p1 = pnand %p1202_p2, %p1196_p9 }
  0x3b   : > { %1206 = shalt.err (!%p1203_p1)
}
  0x3c   : > { %s1313_s12 = smov 128   ;;  %s1314_s13 = smov 8  }
  0x3d   : > { %1084 = dma.hbm_to_vmem [thread:$0]  (!%p1404_p11), %s1627_s3, 1024, %s1408_s6, [#allocation6], %s1313_s12, %s1313_s12, %s1314_s13  }
  0x3e   : > { %s1463_s16 = sadd.s32 1, %s1307_s21   ;;  %s29_s23 = sadd.s32 1, %s1303_s20 }
  0x3f   : > { %s26_s17 = ssub.s32 %s1307_s21, %s1463_s16  ;;  %p36_p6 = scmp.ne.s32.totalorder %s1303_s20, %s1299_s19 }
  0x40   : > { %p27_p13 = scmp.eq.s32.totalorder %s26_s17, 0  ;;  %p37_p10 = scmp.eq.s32.totalorder %s1307_s21, 0 }
  0x41   : > { %p1637_p5 = scmp.eq.s32.totalorder %s1374_s22, 1  ;;  %p1095_p9 = scmp.lt.s32.totalorder %s1307_s21, 2 }
  0x42   : > { %s1472_s27 = scalar_select %p27_p13, %s1303_s20, %s29_s23  }
  0x43   : > { %p38_p3 = por %p37_p10, %p36_p6  ;;  %p1476_p7 = por %p1637_p5, %p36_p6 }
  0x44   : > { %s208_s29 = sand.u32 1, %s1303_s20   ;;  %s966_s6 = sshll.u32 %s1307_s21, 7 }
  0x45   : > { %s1638_s30 = scalar_select %p1476_p7, 1, 0 }
  0x46   : > { %s965_s7 = sshll.u32 %s208_s29, 3  ;;  %s1486_s10 = scalar_lea.hbm %s1624_s0, %s966_s6 }
  0x47   : > { %s212_s11 = scalar_lea.vmem [#allocation2], %s965_s7  ;;  %p1490_p11 = pnand %p1095_p9, %p38_p3 }
  0x48   : > { %s219_s28 = sshll.u32 %s212_s11, 4  ;;  %s209_s13 = scalar_lea.sflag [#allocation3], %s208_s29  ;;  %s1488_s28 = int_to_ptr.vmem [resolvable:$true] %s219_s28 }
  0x49   : > { %s1207_s14 = scalar_lea.hbm %s1486_s10, 128  ;;  %p1209_p0 = pneg %p1490_p11 }
  0x4a   : > { %p1208_p12 = scmp.ne.s32.totalorder %s1486_s10, %s1207_s14  ;;  %s1212_s23 = scalar_lea.hbm %s1624_s0, 256 }
  0x4b   : > { %p1213_p13 = scmp.lt.u32.totalorder %s1486_s10, %s1624_s0  ;;  %p1214_p6 = scmp.lt.u32.totalorder %s1212_s23, %s1207_s14 }
  0x4c   : > { %p1210_p2 = pnand %p1209_p0, %p1208_p12  ;;  %p1216_p3 = scmp.lt.u32.totalorder %s1207_s14, %s1486_s10 }
  0x4d   : > { %p1215_p10 = por %p1214_p6, %p1213_p13 }
  0x4e   : > { %p1211_p1 = pneg %p1210_p2 }
  0x4f   : > { %p1217_p5 = por %p1216_p3, %p1215_p10 }
  0x51   : > { %p1218_p9 = pnand %p1217_p5, %p1211_p1 }
  0x53   : > { %1221 = shalt.err (!%p1218_p9)
}
  0x54   : > { %s1222_s29 = scalar_lea.vmem %s1488_s28, 128  ;;  %s1315_s8 = smov [#allocation2]  }
  0x55   : > { %p1223_p12 = scmp.ne.s32.totalorder %s1488_s28, %s1222_s29  ;;  %s1227_s9 = sshll.u32 %s1315_s8, 4  ;;  %s1228_s9 = int_to_ptr.vmem [resolvable:$false] %s1227_s9 }
  0x56   : > { %s1229_s11 = scalar_lea.vmem %s1228_s9, 256  ;;  %p1230_p4 = scmp.lt.s32.totalorder %s1488_s28, %s1228_s9 }
  0x57   : > { %p1225_p2 = pnand %p1223_p12, %p1209_p0  ;;  %p1231_p13 = scmp.lt.s32.totalorder %s1229_s11, %s1222_s29 }
  0x59   : > { %p1226_p7 = pneg %p1225_p2  ;;  %p1232_p6 = por %p1231_p13, %p1230_p4 }
  0x5b   : > { %p1233_p10 = pnand %p1232_p6, %p1226_p7 }
  0x5d   : > { %1236 = shalt.err (!%p1233_p10)
}
  0x5e   : > { %1088 = dma.hbm_to_vmem [thread:$0]  (!%p1490_p11), %s1486_s10, 128, %s1488_s28, %s209_s13  }
  0x5f   : > { %228 = sbr.rel (%p1393_p8) target bundleno = 1421 (0x58d), region = 40  ;;  %s1522_s14 = sand.u32 (!%p1393_p8), 1, %s1299_s19  }
  0x60   : > { %s968_s15 = sshll.u32 (!%p1393_p8), %s1522_s14, 3  ;;  %s231_s17 = scalar_lea.sflag (!%p1393_p8), [#allocation3], %s1522_s14 }
  0x61   : > { %s234_s23 = scalar_lea.vmem (!%p1393_p8), [#allocation2], %s968_s15  ;;  %p1640_p4 = scmp.ne.s32.totalorder (!%p1393_p8), %s1633_s24, 0 }
  0x66   : > { %1282 = dma.done.wait (%p1640_p4), %s231_s17, 128  }
  0x67   : > { %1284 = vsyncadd (%p1640_p4), %s231_s17, 4294967168  ;;  %p1641_p7 = scmp.eq.s32.totalorder %s1374_s22, 0 }
  0x69   : > { %1286 = dma.done.wait (%p1641_p7), [#allocation6], 2048   ;;  %p1642_p8 = pmov %p1641_p7 }
  0x6a   : > { %v1316_v0 = vmov 0.0   ;;  %v271_v1 = vld [vmem:[#allocation5 + $0x8] sm:$0xff]  ;;  %v273_v2 = vld [vmem:[#allocation5 + $0x18] sm:$0xff]  ;;  %v270_v3 = vld [vmem:[#allocation5] sm:$0xff]  ;;  %vm290_vm0 = vcmask 261120   ;;  %v280_v14 = vlaneseq  ;;  %vm1317_vm1 = vmmov 0  }
  0x6b   : > { %1288 = vsyncadd (%p1642_p8), [#allocation6], 4294965248  ;;  %358 = vmatprep.mubr.f32.mxu0 %v1316_v0  ;;  %1004 = vmatprep.subr.mxu1 %v1316_v0  ;;  %v1046_v4 = vpack.c.bf16 %v273_v2, %v271_v1  ;;  %v272_v5 = vld [vmem:[#allocation5 + $0x10] sm:$0xff]  ;;  %v275_v6 = vld [vmem:[#allocation5 + $0x28] sm:$0xff]  ;;  %s1318_s10 = smov 96   ;;  %s1319_s28 = smov 64  }
  0x6c   : > { %v277_v7 = vld [vmem:[#allocation5 + $0x38] sm:$0xff]  ;;  %v1048_v8 = vpack.c.bf16 %v272_v5, %v270_v3  ;;  %v274_v10 = vld [vmem:[#allocation5 + $0x20] sm:$0xff]  ;;  %v276_v11 = vld [vmem:[#allocation5 + $0x30] sm:$0xff]  ;;  %v281_v15 = vshrl.u32 %v280_v14, 7  ;;  %1006 = vmatprep.mubr.msk.f32.mxu1 %vm1317_vm1, %v1316_v0  ;;  %s1320_s12 = smov 32   ;;  %vm442_vm2 = vcmask 64512  }
  0x6d   : > { %v1050_v9 = vpack.c.bf16 %v277_v7, %v275_v6  ;;  %1047 = vmatprep.subr.bf16.mxu0 %v1046_v4  ;;  %v1052_v12 = vpack.c.bf16 %v276_v11, %v274_v10  ;;  %v269_v13 = vld [vmem:[%s234_s23] sm:$0xff]  ;;  %v1321_v44 = vmov 0.0|0.0   ;;  %v698_v45 = vld [vmem:[#allocation7 + $0x20] sm:$0xff]  ;;  %v699_v46 = vld [vmem:[#allocation7 + $0x28] sm:$0xff]  ;;  %s983_s6 = sshll.u32 %s1374_s22, 7  ;;  %s268_s29 = scalar_lea.vmem [#allocation8], %s968_s15 }
  0x6e   : > { %1049 = vmatpush1.bf16.msra.mxu0 %v1048_v8  ;;  %v282_v16 = vsub.s32 0, %v281_v15  ;;  %v278_v17 = vld [vmem:[%s1626_s2] sm:$0x3]  ;;  %v286_v22 = vsub.s32 1, %v281_v15  ;;  %v1055_v47 = vpack.c.bf16 %v699_v46, %v698_v45  ;;  %v527_v52 = vld [vmem:[#allocation7] sm:$0xff]  ;;  %v528_v53 = vld [vmem:[#allocation7 + $0x8] sm:$0xff]  ;;  %s1580_s17 = scalar_lea.hbm %s1629_s5, %s983_s6 }
  0x6f   : > { %1051 = vmatprep.subr.bf16.mxu0 %v1050_v9  ;;  %v1061_v56 = vpack.c.bf16 %v528_v53, %v527_v52  ;;  %v529_v58 = vld [vmem:[#allocation7 + $0x10] sm:$0xff]  ;;  %v530_v59 = vld [vmem:[#allocation7 + $0x18] sm:$0xff]  ;;  %s871_s8 = sshll.u32 %s268_s29, 4  ;;  %s858_s23 = scalar_lea.sflag [#allocation4], %s1522_s14  ;;  %s1582_s8 = int_to_ptr.vmem [resolvable:$true] %s871_s8 }
  0x70   : > { %v283_v18 = vrot.slane %v278_v17, %v282_v16  ;;  %v287_v23 = vrot.slane %v278_v17, %v286_v22  ;;  %v1064_v60 = vpack.c.bf16 %v530_v59, %v529_v58  ;;  %v700_v61 = vld [vmem:[#allocation7 + $0x30] sm:$0xff]  ;;  %v701_v62 = vld [vmem:[#allocation7 + $0x38] sm:$0xff]  ;;  %s1237_s24 = scalar_lea.vmem %s1582_s8, 128  ;;  %p1643_p0 = scmp.ne.s32.totalorder %s1638_s30, 0 }
  0x71   : > { %v1058_v63 = vpack.c.bf16 %v701_v62, %v700_v61  ;;  %v981_v7 = vld [vmem:[%s1628_s4] ss:$0 sm:$0xff]  ;;  %p1238_p11 = scmp.ne.s32.totalorder %s1582_s8, %s1237_s24  ;;  %s1322_s22 = smov [#allocation8]  }
  0x72   : > { %1053 = vmatpush1.bf16.msra.mxu0 %v1052_v12  ;;  %s1241_s15 = sshll.u32 %s1322_s22, 4  ;;  %s1242_s15 = int_to_ptr.vmem [resolvable:$false] %s1241_s15 }
  0x73   : > { %1014 = vmatprep.subr.mxu0 %v1316_v0  ;;  %p1239_p1 = pnand %p1238_p11, %p1643_p0  ;;  %s1243_s26 = scalar_lea.vmem %s1242_s15, 256 }
  0x74   : > { %p1244_p5 = scmp.lt.s32.totalorder %s1582_s8, %s1242_s15  ;;  %p1245_p9 = scmp.lt.s32.totalorder %s1243_s26, %s1237_s24 }
  0x75   : > { %972 = vmatmul.mubr.msk.f32.vlgmr.msra.gmra.mrb[0].mxu0 %vm290_vm0, %v269_v13  ;;  %p1240_p3 = pneg %p1239_p1 }
  0x76   : > { %1016 = vmatprep.mubr.msk.f32.mxu0 %vm1317_vm1, %v1316_v0  ;;  %p1246_p12 = por %p1245_p9, %p1244_p5 }
  0x78   : > { %p1247_p2 = pnand %p1246_p12, %p1240_p3 }
 0x148   : > { %v360_v19 = vpop.f32.mrb[0].mxu0 }
 0x149   : > { %v361_v20 = vadd.f32 %v360_v19, %v283_v18  ;;  %v362_v21 = vpop.f32.mrb[1].mxu0 }
 0x14a   : > { %v363_v25 = vadd.f32 %v362_v21, %v287_v23 }
 0x14b   : > { %531 = vrot.lane.b32.xlu1 %v361_v20, %s1318_s10  ;;  %366 = vrot.lane.b32.xlu0 %v361_v20, %s1319_s28 }
 0x14f   : > { %533 = vrot.lane.b32.xlu0 %v361_v20, %s1320_s12 }
 0x1bd   : > { %v367_v24 = vpop.permute.xlu0 %366  ;;  %v532_v27 = vpop.permute.xlu1 %531 }
 0x1be   : > { %1005 = vmatpush3.xpose.msk.msra.mxu1 %vm290_vm0, %v367_v24 }
 0x1bf   : > { %1009 = vmatprep.subr.mxu1 %v1316_v0 }
 0x1c1   : > { %1007 = vmatmul.mubr.msk.f32.vlgmr.msra.gmra.mrb[0].mxu1 %vm290_vm0, %v361_v20  ;;  %v534_v26 = vpop.permute.xlu0 %533 }
 0x1c2   : > { %1010 = vmatpush3.msra.mxu1 %v363_v25  ;;  %1015 = vmatpush3.xpose.msk.msra.mxu0 %vm290_vm0, %v534_v26 }
 0x1c3   : > { %1011 = vmatprep.mubr.msk.f32.mxu1 %vm1317_vm1, %v1316_v0  ;;  %1019 = vmatprep.subr.mxu1 %v1316_v0 }
 0x1c4   : > { %1054 = vmatprep.subr.bf16.mxu0 %v1321_v44 }
 0x1c5   : > { %1017 = vmatmul.mubr.msk.f32.vlgmr.msra.gmra.mrb[2].mxu0 %vm290_vm0, %v532_v27 }
 0x1c6   : > { %1032 = vmatprep.mubr.msk.f32.mxu0 %vm1317_vm1, %v1316_v0  ;;  %1056 = vmatpush3.bf16.msra.mxu0 %v1055_v47 }
 0x1c7   : > { %1057 = vmatprep.subr.bf16.mxu0 %v1321_v44 }
 0x1ca   : > { %1059 = vmatpush3.bf16.msra.mxu0 %v1058_v63 }
 0x294   : > { %v438_v28 = vpop.f32.mrb[0].mxu1 }
 0x295   : > { %v1008_v29 = vpop.f32.mrb[1].mxu1  ;;  %v443_v30 = vsel %vm442_vm2, %v438_v28, -inf }
 0x296   : > { %444 = vmax.xlane.f32.xlu1 %v443_v30 }
 0x298   : > { %v605_v31 = vpop.f32.mrb[2].mxu0 }
 0x299   : > { %v1018_v32 = vpop.f32.mrb[3].mxu0  ;;  %v609_v33 = vsel %vm442_vm2, %v605_v31, -inf }
 0x29a   : > { %610 = vmax.xlane.f32.xlu0 %v609_v33 }
 0x323   : > { %v445_v34 = vpop.xlane.xlu1 %444 }
 0x324   : > { %v446_v35 = vsub.f32 %v438_v28, %v445_v34 }
 0x326   : > { %v447_v36 = vmul.f32 1.442695, %v446_v35 }
 0x327   : > { %v611_v37 = vpop.xlane.xlu0 %610 }
 0x328   : > { %1143 = vpow2.f32 %v447_v36  ;;  %v612_v38 = vsub.f32 %v605_v31, %v611_v37 }
 0x32a   : > { %v613_v39 = vmul.f32 1.442695, %v612_v38 }
 0x32c   : > { %1145 = vpow2.f32 %v613_v39 }
 0x332   : > { %v1144_v40 = vpop.eup %1143 }
 0x333   : > { %v449_v41 = vsel %vm442_vm2, %v1144_v40, 0.0 }
 0x334   : > { %450 = vadd.xlane.f32.xlu0 %v449_v41 }
 0x336   : > { %v1146_v42 = vpop.eup %1145 }
 0x337   : > { %v615_v43 = vsel %vm442_vm2, %v1146_v42, 0.0 }
 0x338   : > { %616 = vadd.xlane.f32.xlu1 %v615_v43 }
 0x34a   : > { %621 = vrot.lane.b32.xlu0 %v363_v25, %s1318_s10 }
 0x3c1   : > { %v451_v48 = vpop.xlane.xlu0 %450 }
 0x3c2   : > { %1147 = vrcp.f32 %v451_v48 }
 0x3c5   : > { %v617_v49 = vpop.xlane.xlu1 %616  ;;  %v622_v54 = vpop.permute.xlu0 %621 }
 0x3c6   : > { %1149 = vrcp.f32 %v617_v49 }
 0x3cc   : > { %v1148_v50 = vpop.eup %1147 }
 0x3cd   : > { %v453_v51 = vmul.f32 %v1148_v50, %v1144_v40 }
 0x3cf   : > { %1012 = vmatmul.mubr.msk.f32.vlgmr.msra.gmra.mrb[2].mxu1 %vm442_vm2, %v453_v51 }
 0x3d0   : > { %v1150_v55 = vpop.eup %1149  ;;  %1020 = vmatpush3.msra.mxu1 %v622_v54  ;;  %1021 = vmatprep.mubr.msk.f32.mxu1 %vm1317_vm1, %v1316_v0 }
 0x3d1   : > { %v619_v57 = vmul.f32 %v1150_v55, %v1146_v42  ;;  %1060 = vmatprep.subr.bf16.mxu1 %v1321_v44 }
 0x3d3   : > { %1022 = vmatmul.mubr.msk.f32.vlgmr.msra.gmra.mrb[4].mxu1 %vm442_vm2, %v619_v57 }
 0x3d4   : > { %1062 = vmatpush3.bf16.msra.mxu1 %v1061_v56  ;;  %1043 = vmatprep.mubr.msk.f32.mxu1 %vm1317_vm1, %v1316_v0 }
 0x3d5   : > { %1063 = vmatprep.subr.bf16.mxu1 %v1321_v44 }
 0x3d8   : > { %1065 = vmatpush3.bf16.msra.mxu1 %v1064_v60 }
 0x4a2   : > { %v523_v1 = vpop.f32.mrb[2].mxu1 }
 0x4a3   : > { %v1013_v2 = vpop.f32.mrb[3].mxu1  ;;  %1044 = vmatmul.mubr.msk.f32.vlgmr.msra.gmra.mrb[6].mxu1 %vm290_vm0, %v523_v1 }
 0x4a6   : > { %v693_v3 = vpop.f32.mrb[4].mxu1 }
 0x4a7   : > { %v1023_v4 = vpop.f32.mrb[5].mxu1  ;;  %1033 = vmatmul.mubr.msk.f32.vlgmr.msra.gmra.mrb[4].mxu0 %vm290_vm0, %v693_v3 }
 0x576   : > { %v844_v5 = vpop.f32.mrb[6].mxu1 }
 0x577   : > { %v1045_v0 = vpop.f32.mrb[7].mxu1 }
 0x57a   : > { %v771_v6 = vpop.f32.mrb[4].mxu0 }
 0x57b   : > { %v845_v8 = vadd.f32 %v844_v5, %v771_v6  ;;  %v1034_v9 = vpop.f32.mrb[5].mxu0 }
 0x57d   : > { %v855_v10 = vadd.f32 %v981_v7, %v845_v8 }
 0x57f   : > { %856 = vst [vmem:[%s268_s29] sm:$0xff] %v855_v10 }
 0x580   : > { %1250 = shalt.err (!%p1247_p2)
}
 0x581   : > { %s1251_s14 = scalar_lea.hbm %s1580_s17, 128  ;;  %s1255_s12 = scalar_lea.hbm %s1629_s5, 256 }
 0x582   : > { %p1252_p13 = scmp.ne.s32.totalorder %s1580_s17, %s1251_s14  ;;  %p1256_p4 = scmp.lt.u32.totalorder %s1580_s17, %s1629_s5 }
 0x583   : > { %p1257_p7 = scmp.lt.u32.totalorder %s1255_s12, %s1251_s14  ;;  %p1259_p11 = scmp.lt.u32.totalorder %s1251_s14, %s1580_s17 }
 0x584   : > { %p1253_p6 = pnand %p1252_p13, %p1643_p0 }
 0x585   : > { %p1258_p8 = por %p1257_p7, %p1256_p4 }
 0x586   : > { %p1254_p10 = pneg %p1253_p6 }
 0x587   : > { %p1260_p1 = por %p1259_p11, %p1258_p8 }
 0x589   : > { %p1261_p3 = pnand %p1260_p1, %p1254_p10 }
 0x58b   : > { %1264 = shalt.err (!%p1261_p3)
}
 0x58c   : > { %1076 = dma.vmem_to_hbm [thread:$0]  (%p1643_p0), %s1582_s8, 128, %s1580_s17, %s858_s23  }
 0x58d PF: > { %s883_s6 = sand.u32 1, %s1295_s18   ;;  %p1644_p5 = scmp.ne.s32.totalorder %s1634_s25, 0 }
 0x58e   : > { %p1645_p9 = scmp.ge.s32.totalorder %s1307_s21, 2  ;;  %s884_s29 = scalar_lea.sflag [#allocation4], %s883_s6 }
 0x590   : > { %p1090_p12 = pnand %p1645_p9, %p1644_p5 }
 0x592   : > { %1290 = dma.done.wait (!%p1090_p12), %s884_s29, 128  }
 0x593   : > { %1292 = vsyncadd (!%p1090_p12), %s884_s29, 4294967168  ;;  %p19_p2 = scmp.ge.s32.totalorder %s1463_s16, 4   ;;  %s1646_s18 = smov %s1299_s19 }
 0x594   : > { %s1647_s19 = smov %s1303_s20  ;;  %s1648_s20 = smov %s1472_s27 }
 0x595   : > { %s1649_s21 = smov %s1463_s16  ;;  %21 = sbr.rel (!%p19_p2) target bundleno = 6 (0x6), region = 94 }
 0x59c   :  { %889 = vsyncpa [#allocation3], 1 }
 0x59d   :  { %891 = vsyncpa [#allocation3 + $0x1], 1 }
 0x59e   :  { %892 = vsyncpa [#allocation6], 1 }
 0x59f   :  { %893 = vsyncpa [#allocation4], 1 }
 0x5a0   :  { %895 = vsyncpa [#allocation4 + $0x1], 1 }

</bundles_post_ra>
